<compile_context>
chip_gen: v7x
topology: tpu7x:2x2x1
jax: 0.10.0
libtpu: 0.0.40
codegen_flags: <defaults>
</compile_context>

<pallas_src>
import functools

import jax
import jax.numpy as jnp
from jax import lax
from jax.experimental import pallas as pl
from jax.experimental.pallas import tpu as pltpu


def _round_up(x, m):
    return ((x + m - 1) // m) * m


def _cf_kernel(ids_ref, tab_ref, o_ref):
    # ids_ref : (2, TB) int32  -- row 0: user ids, row 1: item ids already
    #           offset by num_users into the concatenated table (streamed).
    # tab_ref : (Dp, Ncat) f32 -- [user | item] tables, transposed + padded,
    #           VMEM-resident (constant index_map, single-buffered).
    # o_ref   : (1, TB) f32    -- per-row dot products, lane-dense.
    ncat = tab_ref.shape[1]
    tb = ids_ref.shape[1]

    uids = ids_ref[0:1, :]                                    # (1, TB)
    iids = ids_ref[1:2, :]                                    # (1, TB)

    # Exact gather as a one-hot selection on the MXU: each column of `oh` has
    # a single 1.0 at the requested table column, so tab @ oh reproduces the
    # gathered rows bit-exactly, already laid out as (Dp, TB).  User and item
    # selections are fused into one (Ncat, 2*TB) one-hot so a single MXU op
    # (one push/drain) produces both.
    col = lax.broadcasted_iota(jnp.int32, (ncat, tb), 0)
    oh = jnp.concatenate(
        [(col == uids).astype(tab_ref.dtype),
         (col == iids).astype(tab_ref.dtype)], axis=1)        # (Ncat, 2*TB)
    uv = jnp.dot(tab_ref[...], oh,
                 preferred_element_type=jnp.float32)          # (Dp, 2*TB)
    u = uv[:, :tb]
    v = uv[:, tb:]

    # Elementwise product (VPU) + sublane reduction over Dp (XLU).  Zero-padded
    # D rows contribute nothing.  The (1, TB) result stores as an unmasked vst.
    o_ref[...] = jnp.sum(u * v, axis=0, keepdims=True).astype(o_ref.dtype)


def prepare_tables(user_table, item_table):
    """One-time (init-time) layout transform -- NOT in the per-call jit path.

    Pads the embedding dim to a sublane multiple of 8 (zero rows are inert in
    the reduction), transposes to (Dp, N) so D sits on sublanes and the table
    row index on lanes, concatenates [user | item], and pads the lane axis to
    a multiple of 128 for a lane-dense, MXU-aligned resident block.
    """
    num_users, d = user_table.shape
    num_items, d2 = item_table.shape
    assert d == d2, "user/item embedding dims must match"

    dp = _round_up(d, 8)
    ncat = _round_up(num_users + num_items, 128)

    tab = jnp.zeros((dp, ncat), dtype=user_table.dtype)
    tab = tab.at[:d, :num_users].set(user_table.T)
    tab = tab.at[:d, num_users:num_users + num_items].set(item_table.T)
    return jax.block_until_ready(tab), num_users


@functools.partial(jax.jit, static_argnames=("num_users", "batch_tile"))
def collaborative_filtering_forward(user_ids, item_ids, table_packed, *,
                                    num_users, batch_tile=2048):
    """Fused embedding-gather + row-wise dot product.  Returns (B,) float32.

    `table_packed` must come from `prepare_tables` (pre-transposed / padded /
    concatenated), so no table-sized HBM traffic happens per call.
    """
    B = user_ids.shape[0]
    dp, ncat = table_packed.shape

    # Large lane-aligned batch tile, capped at the (128-rounded) batch size so
    # small batches don't pay for wasted rows.
    tb = min(_round_up(max(batch_tile, 128), 128), _round_up(B, 128))
    num_tiles = pl.cdiv(B, tb)
    b_pad = num_tiles * tb

    # Pack both id streams into a single (2, b_pad) int32 array: one DMA per
    # grid step.  Item ids are pre-offset into the concatenated table; the
    # padding value (user row 0 / item row 0) is always a valid column and the
    # padded lanes are sliced off below.
    uid = jnp.pad(user_ids.astype(jnp.int32), (0, b_pad - B))
    iid = jnp.pad(item_ids.astype(jnp.int32), (0, b_pad - B)) + num_users
    ids = jnp.stack([uid, iid], axis=0)                       # (2, b_pad)

    # Raise the scoped-VMEM budget above the 16/32 MiB defaults so realistic
    # resident tables stay in VMEM, while staying under v7x's 64 MiB/TC.
    table_bytes = dp * ncat * table_packed.dtype.itemsize
    vmem_limit_bytes = int(min(64 * 1024 * 1024,
                               max(32 * 1024 * 1024, 4 * table_bytes)))

    out = pl.pallas_call(
        _cf_kernel,
        out_shape=jax.ShapeDtypeStruct((1, b_pad), jnp.float32),
        grid=(num_tiles,),
        in_specs=[
            # Streamed id tile: one small DMA per step.
            pl.BlockSpec((2, tb), lambda i: (0, i)),
            # VMEM-resident table: constant index map (fetched once) and a
            # single buffer (double-buffering a never-changing block is waste).
            pl.BlockSpec((dp, ncat), lambda i: (0, 0),
                         pipeline_mode=pl.Buffered(buffer_count=1)),
        ],
        out_specs=pl.BlockSpec((1, tb), lambda i: (0, i)),
        compiler_params=pltpu.CompilerParams(
            dimension_semantics=("parallel",),
            vmem_limit_bytes=vmem_limit_bytes),
    )(ids, table_packed)

    return out[0, :B]


if __name__ == "__main__":
    # Small, deterministic setup consistent with the module's __init__.
    num_users = 32
    num_items = 64
    embedding_dim = 50     # module default
    batch = 200            # deliberately NOT a multiple of the batch tile

    key = jax.random.PRNGKey(0)
    k_u, k_i, k_uid, k_iid = jax.random.split(key, 4)

    # nn.Embedding default init: weights ~ N(0, 1).
    user_table = jax.random.normal(k_u, (num_users, embedding_dim), jnp.float32)
    item_table = jax.random.normal(k_i, (num_items, embedding_dim), jnp.float32)

    user_ids = jax.random.randint(k_uid, (batch,), 0, num_users, jnp.int32)
    item_ids = jax.random.randint(k_iid, (batch,), 0, num_items, jnp.int32)

    # One-time layout prep (analogous to storing the embedding weights
    # pre-transposed at model init); NOT part of the per-call jitted path.
    table_packed, nu = prepare_tables(user_table, item_table)

    out = collaborative_filtering_forward(user_ids, item_ids, table_packed,
                                          num_users=nu)
    out = jax.block_until_ready(out)

    # Pure-JAX reference check.
    ref = jnp.sum(user_table[user_ids] * item_table[item_ids], axis=1)
    assert out.shape == (batch,)
    assert jnp.allclose(out, ref, atol=1e-5, rtol=1e-5), \
        float(jnp.max(jnp.abs(out - ref)))

    print("KERNEL_OK")
</pallas_src>

<mosaic_0001>
module attributes {stable_mosaic.version = 11 : i64} {
  func.func @_cf_kernel(%arg0: i32, %arg1: memref<2x256xi32, #tpu.memory_space<vmem>>, %arg2: memref<56x128xf32, #tpu.memory_space<vmem>>, %arg3: memref<1x256xf32, #tpu.memory_space<vmem>>) attributes {dimension_semantics = [#tpu.dimension_semantics<parallel>], iteration_bounds = array<i64: 1>, scalar_prefetch = 0 : i64, scratch_operands = 0 : i64, tpu.core_type = #tpu.core_type<tc>, window_params = [{transform_indices = @transform_0, window_bounds = array<i64: 2, 256>}, {pipeline_mode = #tpu.pipeline_mode<synchronous>, transform_indices = @transform_1, window_bounds = array<i64: 56, 128>}, {transform_indices = @transform_2, window_bounds = array<i64: 1, 256>}]} {
    %c0 = arith.constant 0 : index
    %c0_0 = arith.constant 0 : index
    %0 = vector.load %arg1[%c0, %c0_0] : memref<2x256xi32, #tpu.memory_space<vmem>>, vector<1x256xi32>
    %c1 = arith.constant 1 : index
    %c0_1 = arith.constant 0 : index
    %1 = vector.load %arg1[%c1, %c0_1] : memref<2x256xi32, #tpu.memory_space<vmem>>, vector<1x256xi32>
    %2 = tpu.iota {dimensions = array<i32: 0>} : vector<128x256xi32>
    %3 = vector.broadcast %0 : vector<1x256xi32> to vector<128x256xi32>
    %4 = arith.cmpi eq, %2, %3 : vector<128x256xi32>
    %5 = arith.extui %4 : vector<128x256xi1> to vector<128x256xi32>
    %6 = arith.sitofp %5 : vector<128x256xi32> to vector<128x256xf32>
    %7 = vector.broadcast %1 : vector<1x256xi32> to vector<128x256xi32>
    %8 = arith.cmpi eq, %2, %7 : vector<128x256xi32>
    %9 = arith.extui %8 : vector<128x256xi1> to vector<128x256xi32>
    %10 = arith.sitofp %9 : vector<128x256xi32> to vector<128x256xf32>
    %11 = tpu.concatenate %6, %10 in 1 : vector<128x256xf32>, vector<128x256xf32> -> vector<128x512xf32>
    %c0_2 = arith.constant 0 : index
    %c0_3 = arith.constant 0 : index
    %12 = vector.load %arg2[%c0_2, %c0_3] : memref<56x128xf32, #tpu.memory_space<vmem>>, vector<56x128xf32>
    %cst = arith.constant dense<0.000000e+00> : vector<56x512xf32>
    %13 = tpu.matmul %12, %11, %cst {dimension_numbers = #tpu.dot_dimension_numbers<[1], [0], [0], [1], [0, 0, 1, 1], [], []>} : vector<56x128xf32>, vector<128x512xf32>, vector<56x512xf32> -> vector<56x512xf32>
    %14 = vector.extract_strided_slice %13 {offsets = [0, 0], sizes = [56, 256], strides = [1, 1]} : vector<56x512xf32> to vector<56x256xf32>
    %15 = vector.extract_strided_slice %13 {offsets = [0, 256], sizes = [56, 256], strides = [1, 1]} : vector<56x512xf32> to vector<56x256xf32>
    %16 = arith.mulf %14, %15 : vector<56x256xf32>
    %cst_4 = arith.constant dense<0.000000e+00> : vector<256xf32>
    %17 = vector.multi_reduction <add>, %16, %cst_4 [0] : vector<56x256xf32> to vector<256xf32>
    %18 = vector.shape_cast %17 : vector<256xf32> to vector<1x256xf32>
    %c0_5 = arith.constant 0 : index
    %c0_6 = arith.constant 0 : index
    %19 = vector.load %arg3[%c0_5, %c0_6] : memref<1x256xf32, #tpu.memory_space<vmem>>, vector<1x256xf32>
    tpu.vector_store %arg3[%c0_5, %c0_6], %18 {strides = array<i32>} : memref<1x256xf32, #tpu.memory_space<vmem>>, vector<1x256xf32>,
    return
  }
  func.func @transform_0(%arg0: i32) -> (i32, i32) {
    %c0_i32 = arith.constant 0 : i32
    %c0_i32_0 = arith.constant 0 : i32
    return %c0_i32, %arg0 : i32, i32
  }
  func.func @transform_1(%arg0: i32) -> (i32, i32) {
    %c0_i32 = arith.constant 0 : i32
    %c0_i32_0 = arith.constant 0 : i32
    %c0_i32_1 = arith.constant 0 : i32
    return %c0_i32, %c0_i32_0 : i32, i32
  }
  func.func @transform_2(%arg0: i32) -> (i32, i32) {
    %c0_i32 = arith.constant 0 : i32
    %c0_i32_0 = arith.constant 0 : i32
    return %c0_i32, %arg0 : i32, i32
  }
}

</mosaic_0001>

<bundles_post_ra>
// kernel: collaborative_filtering_forward.1
= control target key start
LH: loop header
LB: loop body
LE: loop exit
PB: predicated region body
PF: predicated region fallthrough
CT: control target
= control target key end

     0   :  { %7 = vsyncpa [#allocation3], 0  ;;  %s995_s0 = inlined_call_operand.vmem [shape: s32[2,256], index: 0, kind: input, shape index: {}]   ;;  %s996_s1 = inlined_call_operand.hbm [shape: f32[56,128], index: 1, kind: input, shape index: {}]   ;;  %s997_s2 = inlined_call_operand.hbm [shape: f32[1,256], index: 2, kind: output, shape index: {}]  }
   0x1   :  { %8 = vsyncpa [#allocation4], 0  ;;  %s799_s9 = smov [#allocation2]   ;;  %s751_s13 = scalar_lea.hbm %s996_s1, 896 }
   0x2   :  { %s16_s10 = sshll.u32 %s799_s9, 4  ;;  %p752_p0 = scmp.ne.s32.totalorder %s996_s1, %s751_s13  ;;  %s17_s10 = int_to_ptr.vmem [resolvable:$true] %s16_s10 }
   0x3   :  { %p755_p1 = scmp.lt.u32.totalorder %s751_s13, %s996_s1 }
   0x5   :  { %p757_p2 = pnand %p755_p1, %p752_p0 }
   0x7   :  { %760 = shalt.err (!%p757_p2)
}
   0x8   :  { %s761_s18 = scalar_lea.vmem %s17_s10, 896  ;;  %p766_p4 = scmp.lt.s32.totalorder %s17_s10, %s17_s10 }
   0x9   :  { %p762_p3 = scmp.ne.s32.totalorder %s17_s10, %s761_s18  ;;  %p767_p5 = scmp.lt.s32.totalorder %s761_s18, %s761_s18 }
   0xb   :  { %p768_p6 = por %p767_p5, %p766_p4 }
   0xd   :  { %p769_p7 = pnand %p768_p6, %p762_p3 }
   0xf   :  { %772 = shalt.err (!%p769_p7)
}
  0x10   :  { %s800_s19 = smov 128   ;;  %s801_s20 = smov 8  }
  0x11   :  { %22 = dma.hbm_to_vmem [thread:$0]  %s996_s1, 896, %s17_s10, [#allocation3], %s800_s19, %s800_s19, %s801_s20  }
  0x12   :  { %795 = dma.done.wait [#allocation3], 896  }
  0x13   :  { %796 = vsyncadd [#allocation3], 4294966400  ;;  %v29_v0 = vlaneseq  ;;  %v802_v1 = vmov 0.0   ;;  %v26_v8 = vld [vmem:[%s995_s0] ss:$2 sm:$0x3] }
  0x14   :  { %325 = vmatprep.mubr.f32.mxu0 %v802_v1  ;;  %432 = vmatprep.mubr.f32.mxu1 %v802_v1  ;;  %v551_v9 = vld [vmem:[%s995_s0 + $0x1] ss:$2 sm:$0x3]  ;;  %v803_v14 = vmov 1.0|1.0   ;;  %v254_v27 = vld [vmem:[#allocation2] sm:$0xff] }
  0x15   :  { %v836_v2 = vshrl.u32 %v29_v0, 7  ;;  %v255_v28 = vld [vmem:[#allocation2 + $0x8] sm:$0xff]  ;;  %v256_v29 = vld [vmem:[#allocation2 + $0x10] sm:$0xff]  ;;  %v257_v30 = vld [vmem:[#allocation2 + $0x18] sm:$0xff]  ;;  %s805_s0 = smov [#allocation5]  }
  0x16   :  { %v258_v31 = vld [vmem:[#allocation2 + $0x20] sm:$0xff]  ;;  %v259_v32 = vld [vmem:[#allocation2 + $0x28] sm:$0xff]  ;;  %v260_v33 = vld [vmem:[#allocation2 + $0x30] sm:$0xff]  ;;  %s542_s26 = sshll.u32 %s805_s0, 4  ;;  %s543_s26 = int_to_ptr.vmem [resolvable:$true] %s542_s26 }
  0x17   :  { %v52_v3 = vsub.s32 1, %v836_v2  ;;  %v48_v4 = vsub.s32 0, %v836_v2  ;;  %v31_v5 = vadd.s32 8, %v836_v2  ;;  %v32_v6 = vadd.s32 16, %v836_v2  ;;  %s773_s27 = scalar_lea.vmem %s543_s26, 32  ;;  %p778_p9 = scmp.lt.s32.totalorder %s543_s26, %s543_s26 }
  0x18   :  { %v33_v7 = vadd.s32 24, %v836_v2  ;;  %v34_v15 = vadd.s32 32, %v836_v2  ;;  %v35_v16 = vadd.s32 40, %v836_v2  ;;  %v36_v17 = vadd.s32 48, %v836_v2  ;;  %p774_p8 = scmp.ne.s32.totalorder %s543_s26, %s773_s27  ;;  %p779_p10 = scmp.lt.s32.totalorder %s773_s27, %s773_s27 }
  0x19   :  { %v849_v10 = vrot.slane %v26_v8, %v52_v3  ;;  %v851_v11 = vrot.slane %v551_v9, %v52_v3  ;;  %v853_v12 = vrot.slane %v26_v8, %v48_v4  ;;  %v855_v13 = vrot.slane %v551_v9, %v48_v4 }
  0x1a   :  { %v37_v18 = vadd.s32 56, %v836_v2  ;;  %v38_v19 = vadd.s32 64, %v836_v2  ;;  %v39_v20 = vadd.s32 72, %v836_v2  ;;  %v40_v21 = vadd.s32 80, %v836_v2  ;;  %p780_p11 = por %p779_p10, %p778_p9 }
  0x1b   :  { %vm55_vm0 = vcmp.eq.s32.totalorder %v836_v2, %v849_v10  ;;  %vm57_vm1 = vcmp.eq.s32.totalorder %v31_v5, %v849_v10  ;;  %vm159_vm2 = vcmp.eq.s32.totalorder %v836_v2, %v851_v11  ;;  %vm161_vm3 = vcmp.eq.s32.totalorder %v31_v5, %v851_v11 }
  0x1c   :  { %vm680_vm4 = vmpackc.low %vm57_vm1, %vm55_vm0  ;;  %vm54_vm5 = vcmp.eq.s32.totalorder %v836_v2, %v853_v12  ;;  %vm56_vm6 = vcmp.eq.s32.totalorder %v31_v5, %v853_v12  ;;  %vm158_vm7 = vcmp.eq.s32.totalorder %v836_v2, %v855_v13  ;;  %vm160_vm8 = vcmp.eq.s32.totalorder %v31_v5, %v855_v13  ;;  %p781_p12 = pnand %p780_p11, %p774_p8 }
  0x1d   :  { %681 = vmatprep.subr.msk.bf16.mxu0 %vm680_vm4, %v803_v14  ;;  %vm712_vm9 = vmpackc.low %vm161_vm3, %vm159_vm2  ;;  %vm59_vm10 = vcmp.eq.s32.totalorder %v32_v6, %v849_v10  ;;  %vm61_vm11 = vcmp.eq.s32.totalorder %v33_v7, %v849_v10  ;;  %vm163_vm13 = vcmp.eq.s32.totalorder %v32_v6, %v851_v11  ;;  %vm165_vm14 = vcmp.eq.s32.totalorder %v33_v7, %v851_v11 }
  0x1e   :  { %713 = vmatprep.subr.msk.bf16.mxu1 %vm712_vm9, %v803_v14  ;;  %vm682_vm12 = vmpackc.low %vm56_vm6, %vm54_vm5  ;;  %vm58_vm0 = vcmp.eq.s32.totalorder %v32_v6, %v853_v12  ;;  %vm60_vm1 = vcmp.eq.s32.totalorder %v33_v7, %v853_v12  ;;  %vm162_vm3 = vcmp.eq.s32.totalorder %v32_v6, %v855_v13  ;;  %vm164_vm4 = vcmp.eq.s32.totalorder %v33_v7, %v855_v13 }
  0x1f   :  { %683 = vmatpush1.bf16.msk.msra.mxu0 %vm682_vm12, %v803_v14  ;;  %vm714_vm15 = vmpackc.low %vm160_vm8, %vm158_vm7  ;;  %vm63_vm6 = vcmp.eq.s32.totalorder %v34_v15, %v849_v10  ;;  %vm65_vm9 = vcmp.eq.s32.totalorder %v35_v16, %v849_v10  ;;  %vm167_vm8 = vcmp.eq.s32.totalorder %v34_v15, %v851_v11  ;;  %vm62_vm12 = vcmp.eq.s32.totalorder %v34_v15, %v853_v12 }
  0x20   :  { %715 = vmatpush1.bf16.msk.msra.mxu1 %vm714_vm15, %v803_v14  ;;  %vm684_vm2 = vmpackc.low %vm61_vm11, %vm59_vm10  ;;  %vm169_vm10 = vcmp.eq.s32.totalorder %v35_v16, %v851_v11  ;;  %vm166_vm15 = vcmp.eq.s32.totalorder %v34_v15, %v855_v13  ;;  %v41_v22 = vadd.s32 88, %v836_v2  ;;  %v42_v23 = vadd.s32 96, %v836_v2 }
  0x21   :  { %685 = vmatprep.subr.msk.bf16.mxu0 %vm684_vm2, %v803_v14  ;;  %vm716_vm5 = vmpackc.low %vm165_vm14, %vm163_vm13  ;;  %vm64_vm13 = vcmp.eq.s32.totalorder %v35_v16, %v853_v12  ;;  %vm168_vm2 = vcmp.eq.s32.totalorder %v35_v16, %v855_v13  ;;  %v43_v24 = vadd.s32 104, %v836_v2  ;;  %v44_v25 = vadd.s32 112, %v836_v2 }
  0x22   :  { %717 = vmatprep.subr.msk.bf16.mxu1 %vm716_vm5, %v803_v14  ;;  %vm686_vm7 = vmpackc.low %vm60_vm1, %vm58_vm0  ;;  %vm67_vm1 = vcmp.eq.s32.totalorder %v36_v17, %v849_v10  ;;  %vm69_vm5 = vcmp.eq.s32.totalorder %v37_v18, %v849_v10  ;;  %v45_v26 = vadd.s32 120, %v836_v2 }
  0x23   :  { %687 = vmatpush1.bf16.msk.msra.mxu0 %vm686_vm7, %v803_v14  ;;  %vm718_vm11 = vmpackc.low %vm164_vm4, %vm162_vm3  ;;  %vm171_vm4 = vcmp.eq.s32.totalorder %v36_v17, %v851_v11  ;;  %vm66_vm7 = vcmp.eq.s32.totalorder %v36_v17, %v853_v12 }
  0x24   :  { %719 = vmatpush1.bf16.msk.msra.mxu1 %vm718_vm11, %v803_v14  ;;  %vm688_vm14 = vmpackc.low %vm65_vm9, %vm63_vm6  ;;  %vm173_vm6 = vcmp.eq.s32.totalorder %v37_v18, %v851_v11  ;;  %vm170_vm11 = vcmp.eq.s32.totalorder %v36_v17, %v855_v13 }
  0x25   :  { %689 = vmatprep.subr.msk.bf16.mxu0 %vm688_vm14, %v803_v14  ;;  %vm720_vm0 = vmpackc.low %vm169_vm10, %vm167_vm8  ;;  %vm68_vm8 = vcmp.eq.s32.totalorder %v37_v18, %v853_v12  ;;  %vm172_vm14 = vcmp.eq.s32.totalorder %v37_v18, %v855_v13 }
  0x26   :  { %721 = vmatprep.subr.msk.bf16.mxu1 %vm720_vm0, %v803_v14  ;;  %vm690_vm3 = vmpackc.low %vm64_vm13, %vm62_vm12  ;;  %vm71_vm13 = vcmp.eq.s32.totalorder %v38_v19, %v849_v10  ;;  %vm73_vm0 = vcmp.eq.s32.totalorder %v39_v20, %v849_v10 }
  0x27   :  { %691 = vmatpush1.bf16.msk.msra.mxu0 %vm690_vm3, %v803_v14  ;;  %vm722_vm9 = vmpackc.low %vm168_vm2, %vm166_vm15  ;;  %vm175_vm2 = vcmp.eq.s32.totalorder %v38_v19, %v851_v11  ;;  %vm70_vm3 = vcmp.eq.s32.totalorder %v38_v19, %v853_v12 }
  0x28   :  { %723 = vmatpush1.bf16.msk.msra.mxu1 %vm722_vm9, %v803_v14  ;;  %vm692_vm10 = vmpackc.low %vm69_vm5, %vm67_vm1  ;;  %vm177_vm1 = vcmp.eq.s32.totalorder %v39_v20, %v851_v11  ;;  %vm174_vm9 = vcmp.eq.s32.totalorder %v38_v19, %v855_v13 }
  0x29   :  { %693 = vmatprep.subr.msk.bf16.mxu0 %vm692_vm10, %v803_v14  ;;  %vm724_vm12 = vmpackc.low %vm173_vm6, %vm171_vm4  ;;  %vm72_vm4 = vcmp.eq.s32.totalorder %v39_v20, %v853_v12  ;;  %vm176_vm10 = vcmp.eq.s32.totalorder %v39_v20, %v855_v13 }
  0x2a   :  { %725 = vmatprep.subr.msk.bf16.mxu1 %vm724_vm12, %v803_v14  ;;  %vm694_vm15 = vmpackc.low %vm68_vm8, %vm66_vm7  ;;  %vm75_vm8 = vcmp.eq.s32.totalorder %v40_v21, %v849_v10  ;;  %vm77_vm12 = vcmp.eq.s32.totalorder %v41_v22, %v849_v10 }
  0x2b   :  { %695 = vmatpush1.bf16.msk.msra.mxu0 %vm694_vm15, %v803_v14  ;;  %vm726_vm5 = vmpackc.low %vm172_vm14, %vm170_vm11  ;;  %vm179_vm14 = vcmp.eq.s32.totalorder %v40_v21, %v851_v11  ;;  %vm74_vm15 = vcmp.eq.s32.totalorder %v40_v21, %v853_v12 }
  0x2c   :  { %727 = vmatpush1.bf16.msk.msra.mxu1 %vm726_vm5, %v803_v14  ;;  %vm696_vm6 = vmpackc.low %vm73_vm0, %vm71_vm13  ;;  %vm181_vm13 = vcmp.eq.s32.totalorder %v41_v22, %v851_v11  ;;  %vm178_vm5 = vcmp.eq.s32.totalorder %v40_v21, %v855_v13 }
  0x2d   :  { %697 = vmatprep.subr.msk.bf16.mxu0 %vm696_vm6, %v803_v14  ;;  %vm728_vm7 = vmpackc.low %vm177_vm1, %vm175_vm2  ;;  %vm76_vm2 = vcmp.eq.s32.totalorder %v41_v22, %v853_v12  ;;  %vm180_vm6 = vcmp.eq.s32.totalorder %v41_v22, %v855_v13 }
  0x2e   :  { %729 = vmatprep.subr.msk.bf16.mxu1 %vm728_vm7, %v803_v14  ;;  %vm698_vm11 = vmpackc.low %vm72_vm4, %vm70_vm3  ;;  %vm79_vm4 = vcmp.eq.s32.totalorder %v42_v23, %v849_v10  ;;  %vm81_vm7 = vcmp.eq.s32.totalorder %v43_v24, %v849_v10 }
  0x2f   :  { %699 = vmatpush1.bf16.msk.msra.mxu0 %vm698_vm11, %v803_v14  ;;  %vm730_vm0 = vmpackc.low %vm176_vm10, %vm174_vm9  ;;  %vm183_vm10 = vcmp.eq.s32.totalorder %v42_v23, %v851_v11  ;;  %vm78_vm11 = vcmp.eq.s32.totalorder %v42_v23, %v853_v12 }
  0x30   :  { %731 = vmatpush1.bf16.msk.msra.mxu1 %vm730_vm0, %v803_v14  ;;  %vm700_vm1 = vmpackc.low %vm77_vm12, %vm75_vm8  ;;  %vm185_vm8 = vcmp.eq.s32.totalorder %v43_v24, %v851_v11  ;;  %vm182_vm0 = vcmp.eq.s32.totalorder %v42_v23, %v855_v13 }
  0x31   :  { %701 = vmatprep.subr.msk.bf16.mxu0 %vm700_vm1, %v803_v14  ;;  %vm732_vm3 = vmpackc.low %vm181_vm13, %vm179_vm14  ;;  %vm80_vm14 = vcmp.eq.s32.totalorder %v43_v24, %v853_v12  ;;  %vm184_vm1 = vcmp.eq.s32.totalorder %v43_v24, %v855_v13 }
  0x32   :  { %733 = vmatprep.subr.msk.bf16.mxu1 %vm732_vm3, %v803_v14  ;;  %vm702_vm9 = vmpackc.low %vm76_vm2, %vm74_vm15  ;;  %vm83_vm2 = vcmp.eq.s32.totalorder %v44_v25, %v849_v10  ;;  %vm85_vm3 = vcmp.eq.s32.totalorder %v45_v26, %v849_v10 }
  0x33   :  { %703 = vmatpush1.bf16.msk.msra.mxu0 %vm702_vm9, %v803_v14  ;;  %vm734_vm12 = vmpackc.low %vm180_vm6, %vm178_vm5  ;;  %vm187_vm6 = vcmp.eq.s32.totalorder %v44_v25, %v851_v11  ;;  %vm189_vm9 = vcmp.eq.s32.totalorder %v45_v26, %v851_v11 }
  0x34   :  { %735 = vmatpush1.bf16.msk.msra.mxu1 %vm734_vm12, %v803_v14  ;;  %vm704_vm13 = vmpackc.low %vm81_vm7, %vm79_vm4  ;;  %vm82_vm7 = vcmp.eq.s32.totalorder %v44_v25, %v853_v12  ;;  %vm84_vm12 = vcmp.eq.s32.totalorder %v45_v26, %v853_v12 }
  0x35   :  { %705 = vmatprep.subr.msk.bf16.mxu0 %vm704_vm13, %v803_v14  ;;  %vm736_vm15 = vmpackc.low %vm185_vm8, %vm183_vm10  ;;  %vm186_vm8 = vcmp.eq.s32.totalorder %v44_v25, %v855_v13  ;;  %vm188_vm13 = vcmp.eq.s32.totalorder %v45_v26, %v855_v13 }
  0x36   :  { %737 = vmatprep.subr.msk.bf16.mxu1 %vm736_vm15, %v803_v14  ;;  %vm706_vm5 = vmpackc.low %vm80_vm14, %vm78_vm11 }
  0x37   :  { %707 = vmatpush1.bf16.msk.msra.mxu0 %vm706_vm5, %v803_v14  ;;  %vm738_vm4 = vmpackc.low %vm184_vm1, %vm182_vm0  ;;  %vm533_vm1 = vcmp.lt.s32.totalorder %v29_v0, 256 }
  0x38   :  { %739 = vmatpush1.bf16.msk.msra.mxu1 %vm738_vm4, %v803_v14  ;;  %vm708_vm10 = vmpackc.low %vm85_vm3, %vm83_vm2 }
  0x39   :  { %709 = vmatprep.subr.msk.bf16.mxu0 %vm708_vm10, %v803_v14  ;;  %vm740_vm11 = vmpackc.low %vm189_vm9, %vm187_vm6 }
  0x3a   :  { %741 = vmatprep.subr.msk.bf16.mxu1 %vm740_vm11, %v803_v14  ;;  %vm710_vm14 = vmpackc.low %vm84_vm12, %vm82_vm7 }
  0x3b   :  { %711 = vmatpush1.bf16.msk.msra.mxu0 %vm710_vm14, %v803_v14  ;;  %vm742_vm0 = vmpackc.low %vm188_vm13, %vm186_vm8 }
  0x3c   :  { %743 = vmatpush1.bf16.msk.msra.mxu1 %vm742_vm0, %v803_v14 }
  0x3e   :  { %326 = vmatmul.mubr.f32.vlgmr.msra.gmra.mrb[0].mxu0 %v254_v27 }
  0x3f   :  { %433 = vmatmul.mubr.f32.vlgmr.msra.gmra.mrb[0].mxu1 %v254_v27  ;;  %331 = vmatprep.mubr.f32.mxu0 %v802_v1 }
  0x40   :  { %438 = vmatprep.mubr.f32.mxu1 %v802_v1 }
  0x42   :  { %332 = vmatmul.mubr.f32.gmra.mrb[2].mxu0 %v255_v28 }
  0x43   :  { %439 = vmatmul.mubr.f32.gmra.mrb[2].mxu1 %v255_v28  ;;  %337 = vmatprep.mubr.f32.mxu0 %v802_v1 }
  0x44   :  { %444 = vmatprep.mubr.f32.mxu1 %v802_v1 }
  0x46   :  { %338 = vmatmul.mubr.f32.gmra.mrb[4].mxu0 %v256_v29 }
  0x47   :  { %445 = vmatmul.mubr.f32.gmra.mrb[4].mxu1 %v256_v29  ;;  %343 = vmatprep.mubr.f32.mxu0 %v802_v1 }
  0x48   :  { %450 = vmatprep.mubr.f32.mxu1 %v802_v1 }
  0x4a   :  { %344 = vmatmul.mubr.f32.gmra.mrb[6].mxu0 %v257_v30 }
  0x4b   :  { %451 = vmatmul.mubr.f32.gmra.mrb[6].mxu1 %v257_v30  ;;  %349 = vmatprep.mubr.f32.mxu0 %v802_v1  ;;  %v804_v30 = vmov 1966171168  }
  0x4c   :  { %456 = vmatprep.mubr.f32.mxu1 %v802_v1 }
  0x4e   :  { %350 = vmatmul.mubr.f32.gmra.mrb[8].mxu0 %v258_v31 }
  0x4f   :  { %457 = vmatmul.mubr.f32.gmra.mrb[8].mxu1 %v258_v31  ;;  %355 = vmatprep.mubr.f32.mxu0 %v802_v1  ;;  %v517_v31 = vunpack.c.l.s4 %v804_v30 }
  0x50   :  { %462 = vmatprep.mubr.f32.mxu1 %v802_v1 }
  0x52   :  { %356 = vmatmul.mubr.f32.gmra.mrb[10].mxu0 %v259_v32 }
  0x53   :  { %463 = vmatmul.mubr.f32.gmra.mrb[10].mxu1 %v259_v32  ;;  %361 = vmatprep.mubr.f32.mxu0 %v802_v1 }
  0x54   :  { %468 = vmatprep.mubr.f32.mxu1 %v802_v1 }
  0x56   :  { %362 = vmatmul.mubr.f32.gmra.mrb[12].mxu0 %v260_v33 }
  0x57   :  { %469 = vmatmul.mubr.f32.gmra.mrb[12].mxu1 %v260_v33 }
 0x111   :  { %v327_v34 = vpop.f32.mrb[0].mxu0 }
 0x112   :  { %v434_v35 = vpop.f32.mrb[0].mxu1  ;;  %v329_v36 = vpop.f32.mrb[1].mxu0 }
 0x113   :  { %v475_v37 = vmul.f32 %v434_v35, %v327_v34  ;;  %v436_v38 = vpop.f32.mrb[1].mxu1 }
 0x114   :  { %v476_v39 = vmul.f32 %v436_v38, %v329_v36  ;;  %v518_v36 = vunpack.c.0.s8 %v517_v31 }
 0x115   :  { %v333_v40 = vpop.f32.mrb[2].mxu0 }
 0x116   :  { %v440_v41 = vpop.f32.mrb[2].mxu1  ;;  %v335_v42 = vpop.f32.mrb[3].mxu0 }
 0x117   :  { %v477_v43 = vmul.f32 %v440_v41, %v333_v40  ;;  %v442_v44 = vpop.f32.mrb[3].mxu1  ;;  %v521_v41 = vsub.s32 %v518_v36, %v836_v2 }
 0x118   :  { %v478_v45 = vmul.f32 %v442_v44, %v335_v42 }
 0x119   :  { %v489_v46 = vadd.f32 %v477_v43, %v475_v37  ;;  %v339_v47 = vpop.f32.mrb[4].mxu0 }
 0x11a   :  { %v501_v48 = vadd.f32 %v478_v45, %v476_v39  ;;  %v446_v49 = vpop.f32.mrb[4].mxu1  ;;  %v341_v50 = vpop.f32.mrb[5].mxu0 }
 0x11b   :  { %v479_v51 = vmul.f32 %v446_v49, %v339_v47  ;;  %v448_v52 = vpop.f32.mrb[5].mxu1 }
 0x11c   :  { %v480_v53 = vmul.f32 %v448_v52, %v341_v50 }
 0x11d   :  { %v490_v54 = vadd.f32 %v489_v46, %v479_v51  ;;  %v345_v55 = vpop.f32.mrb[6].mxu0 }
 0x11e   :  { %v502_v56 = vadd.f32 %v501_v48, %v480_v53  ;;  %v452_v57 = vpop.f32.mrb[6].mxu1  ;;  %v347_v58 = vpop.f32.mrb[7].mxu0 }
 0x11f   :  { %v481_v59 = vmul.f32 %v452_v57, %v345_v55  ;;  %v454_v60 = vpop.f32.mrb[7].mxu1 }
 0x120   :  { %v482_v61 = vmul.f32 %v454_v60, %v347_v58 }
 0x121   :  { %v491_v62 = vadd.f32 %v490_v54, %v481_v59  ;;  %v351_v63 = vpop.f32.mrb[8].mxu0 }
 0x122   :  { %v503_v1 = vadd.f32 %v502_v56, %v482_v61  ;;  %v458_v3 = vpop.f32.mrb[8].mxu1  ;;  %v353_v4 = vpop.f32.mrb[9].mxu0 }
 0x123   :  { %v483_v5 = vmul.f32 %v458_v3, %v351_v63  ;;  %v460_v6 = vpop.f32.mrb[9].mxu1 }
 0x124   :  { %v484_v7 = vmul.f32 %v460_v6, %v353_v4 }
 0x125   :  { %v492_v8 = vadd.f32 %v491_v62, %v483_v5  ;;  %v357_v9 = vpop.f32.mrb[10].mxu0 }
 0x126   :  { %v504_v10 = vadd.f32 %v503_v1, %v484_v7  ;;  %v464_v11 = vpop.f32.mrb[10].mxu1  ;;  %v359_v12 = vpop.f32.mrb[11].mxu0 }
 0x127   :  { %v485_v13 = vmul.f32 %v464_v11, %v357_v9  ;;  %v466_v14 = vpop.f32.mrb[11].mxu1 }
 0x128   :  { %v486_v15 = vmul.f32 %v466_v14, %v359_v12 }
 0x129   :  { %v493_v16 = vadd.f32 %v492_v8, %v485_v13  ;;  %v363_v17 = vpop.f32.mrb[12].mxu0 }
 0x12a   :  { %v505_v18 = vadd.f32 %v504_v10, %v486_v15  ;;  %v470_v19 = vpop.f32.mrb[12].mxu1  ;;  %v365_v20 = vpop.f32.mrb[13].mxu0 }
 0x12b   :  { %v487_v21 = vmul.f32 %v470_v19, %v363_v17  ;;  %v472_v22 = vpop.f32.mrb[13].mxu1 }
 0x12c   :  { %v488_v23 = vmul.f32 %v472_v22, %v365_v20 }
 0x12d   :  { %v494_v24 = vadd.f32 %v493_v16, %v487_v21 }
 0x12e   :  { %v506_v25 = vadd.f32 %v505_v18, %v488_v23 }
 0x12f   :  { %v495_v26 = vrot.slane %v494_v24, 4 }
 0x130   :  { %v507_v27 = vrot.slane %v506_v25, 4 }
 0x131   :  { %v496_v28 = vadd.f32 %v495_v26, %v494_v24 }
 0x132   :  { %v508_v29 = vadd.f32 %v507_v27, %v506_v25 }
 0x133   :  { %v497_v32 = vrot.slane %v496_v28, 2 }
 0x134   :  { %v509_v33 = vrot.slane %v508_v29, 2 }
 0x135   :  { %v498_v34 = vadd.f32 %v497_v32, %v496_v28 }
 0x136   :  { %v510_v35 = vadd.f32 %v509_v33, %v508_v29 }
 0x137   :  { %v499_v37 = vrot.slane %v498_v34, 1 }
 0x138   :  { %v511_v38 = vrot.slane %v510_v35, 1 }
 0x139   :  { %v500_v39 = vadd.f32 %v499_v37, %v498_v34 }
 0x13a   :  { %v512_v40 = vadd.f32 %v511_v38, %v510_v35 }
 0x13c   :  { %v515_v42 = vcombine.low %v500_v39, %v512_v40 }
 0x13e   :  { %v522_v43 = vrot.slane %v515_v42, %v521_v41 }
 0x140   :  { %v529_v44 = vrot.slane %v522_v43, %v521_v41 }
 0x142   :  { %535 = vst.msk [vmem:[#allocation5] sm:$0x3] %vm533_vm1, %v529_v44 }
 0x143   :  { %784 = shalt.err (!%p781_p12)
}
 0x144   :  { %s785_s30 = scalar_lea.hbm %s997_s2, 32 }
 0x145   :  { %p786_p13 = scmp.ne.s32.totalorder %s997_s2, %s785_s30  ;;  %p789_p0 = scmp.lt.u32.totalorder %s785_s30, %s997_s2 }
 0x147   :  { %p791_p1 = pnand %p789_p0, %p786_p13 }
 0x149   :  { %794 = shalt.err (!%p791_p1)
}
 0x14a   :  { %545 = dma.vmem_to_hbm [thread:$0]  %s543_s26, 32, %s997_s2, [#allocation4]  }
 0x14b   :  { %797 = dma.done.wait [#allocation4], 32  }
 0x14c   :  { %798 = vsyncadd [#allocation4], 4294967264 }
 0x14d   :  { %549 = vsyncpa [#allocation3], 1 }
 0x14e   :  { %550 = vsyncpa [#allocation4], 1 }

</bundles_post_ra>
